<compile_context>
chip_gen: v5e
topology: v5e:2x2
jax: 0.10.0
libtpu: 0.0.40
codegen_flags: <defaults>
</compile_context>

<pallas_src>
import math

import jax
import jax.numpy as jnp
from jax.experimental import pallas as pl
from jax.experimental.pallas import tpu as pltpu


def _round_up(x, m):
    return (x + m - 1) // m * m


def _cdiv(a, b):
    return (a + b - 1) // b


# --------------------------------------------------------------------------- kernel


def mlp_kernel(x_ref, w1_ref, b1_ref, w2_ref, b2_ref, w3_ref, b3_ref, o_ref):
    # Layer 1: Linear -> Dropout(0.1) (eval mode: identity) -> ReLU.
    # bf16 MXU operands, f32 accumulation / bias add / activations.
    x = x_ref[...].astype(jnp.bfloat16)
    h1 = jnp.dot(x, w1_ref[...], preferred_element_type=jnp.float32) + b1_ref[...]
    h1 = jnp.maximum(h1, 0.0)

    # Layer 2: Linear -> Tanh.
    h2 = jnp.dot(h1.astype(jnp.bfloat16), w2_ref[...],
                 preferred_element_type=jnp.float32) + b2_ref[...]
    h2 = jnp.tanh(h2)

    # Layer 3: Linear.
    out = jnp.dot(h2.astype(jnp.bfloat16), w3_ref[...],
                  preferred_element_type=jnp.float32) + b3_ref[...]
    o_ref[...] = out.astype(o_ref.dtype)


# ------------------------------------------------------------------- parameter prep


def prepare_params(params, *, weight_dtype=jnp.bfloat16):
    """One-time prep: pad feature dims to lane multiples (128), cast weights to bf16.

    Zero padding keeps the math exact: padded input lanes hit zero weight rows and
    padded hidden/output lanes stay exactly zero through bias-add / ReLU / tanh.
    Biases are kept f32 (tiny; added to the f32 accumulator).
    """
    w1, b1, w2, b2, w3, b3 = params
    in_dim, hidden_dim = w1.shape
    out_dim = w3.shape[1]
    in_p = _round_up(in_dim, 128)
    hid_p = _round_up(hidden_dim, 128)
    out_p = _round_up(out_dim, 128)

    w1p = jnp.pad(w1, ((0, in_p - in_dim), (0, hid_p - hidden_dim))).astype(weight_dtype)
    w2p = jnp.pad(w2, ((0, hid_p - hidden_dim), (0, hid_p - hidden_dim))).astype(weight_dtype)
    w3p = jnp.pad(w3, ((0, hid_p - hidden_dim), (0, out_p - out_dim))).astype(weight_dtype)
    b1p = jnp.pad(b1.reshape(1, -1), ((0, 0), (0, hid_p - hidden_dim))).astype(jnp.float32)
    b2p = jnp.pad(b2.reshape(1, -1), ((0, 0), (0, hid_p - hidden_dim))).astype(jnp.float32)
    b3p = jnp.pad(b3.reshape(1, -1), ((0, 0), (0, out_p - out_dim))).astype(jnp.float32)

    return {
        "weights": (w1p, b1p, w2p, b2p, w3p, b3p),
        "dims": (in_dim, hidden_dim, out_dim),
        "padded_dims": (in_p, hid_p, out_p),
    }


# ----------------------------------------------------------------------- tiling util


def _choose_batch_tile(batch, batch_tile):
    tb = max(8, _round_up(min(batch_tile, _round_up(batch, 8)), 8))
    # Shrink the tile while padded-tail waste exceeds ~25% of total padded work.
    while tb > 8:
        b_p = _round_up(batch, tb)
        if (b_p - batch) * 4 < b_p:
            break
        tb = max(8, _round_up(tb // 2, 8))
    # v7x megacore: make sure the "parallel" batch grid has >= 2 tiles so work can
    # shard across both TensorCores (no cost on single-TC v5e/v6e).
    if _round_up(batch, tb) // tb < 2 and batch >= 16:
        tb = max(8, _round_up(_cdiv(batch, 2), 8))
    return tb


_SINGLE_BUFFER_WEIGHTS_OK = True  # toggled off at runtime if pl.Buffered(1) is rejected


def _build_call(tb, b_p, in_p, hid_p, out_p, weight_shapes, single_buffer_weights):
    def resident(shape):
        ndim = len(shape)
        index_map = lambda i: (0,) * ndim  # noqa: E731 (constant block index)
        if single_buffer_weights:
            # Constant index_map -> the second pipeline buffer is pure VMEM waste.
            return pl.BlockSpec(shape, index_map, pipeline_mode=pl.Buffered(1))
        return pl.BlockSpec(shape, index_map)

    in_specs = [pl.BlockSpec((tb, in_p), lambda i: (i, 0))]       # x: streamed over batch
    in_specs += [resident(s) for s in weight_shapes]              # weights/biases: resident

    # Explicit VMEM budget: resident bf16 weights + f32 biases (x buffer count),
    # double-buffered f32 x/out tiles, f32 intermediates, plus headroom.
    wbuf = 1 if single_buffer_weights else 2
    wbytes = wbuf * 2 * (in_p * hid_p + hid_p * hid_p + hid_p * out_p)
    bbytes = wbuf * 4 * (2 * hid_p + out_p)
    stream = 2 * 4 * tb * (in_p + out_p)
    interm = 3 * 4 * tb * hid_p
    vmem_limit = min(max(int(1.5 * (wbytes + bbytes + stream + interm)) + (4 << 20),
                         32 << 20), 64 << 20)

    return pl.pallas_call(
        mlp_kernel,
        out_shape=jax.ShapeDtypeStruct((b_p, out_p), jnp.float32),
        grid=(b_p // tb,),
        in_specs=in_specs,
        out_specs=pl.BlockSpec((tb, out_p), lambda i: (i, 0)),
        compiler_params=pltpu.CompilerParams(
            dimension_semantics=("parallel",),
            vmem_limit_bytes=vmem_limit,
        ),
    )


# --------------------------------------------------------------------------- forward


def mlp_forward(x, prepared, *, batch_tile=512):
    """Fused MLP forward. x: [B, in_dim] float32 -> [B, out_dim] float32."""
    global _SINGLE_BUFFER_WEIGHTS_OK
    weights = prepared["weights"]
    in_dim, hidden_dim, out_dim = prepared["dims"]
    in_p, hid_p, out_p = prepared["padded_dims"]
    batch = x.shape[0]

    tb = _choose_batch_tile(batch, batch_tile)
    b_p = _round_up(batch, tb)

    # Pad x only when needed (padded input lanes multiply zero weight rows -> exact).
    if x.shape != (b_p, in_p):
        x = jnp.pad(x, ((0, b_p - batch), (0, in_p - x.shape[1])))

    wshapes = tuple(w.shape for w in weights)
    try:
        call = _build_call(tb, b_p, in_p, hid_p, out_p, wshapes,
                           single_buffer_weights=_SINGLE_BUFFER_WEIGHTS_OK)
        out_padded = call(x, *weights)
    except Exception:
        if not _SINGLE_BUFFER_WEIGHTS_OK:
            raise
        # pl.Buffered(1) not supported on this jax version -> plain (double-buffered) specs.
        _SINGLE_BUFFER_WEIGHTS_OK = False
        call = _build_call(tb, b_p, in_p, hid_p, out_p, wshapes,
                           single_buffer_weights=False)
        out_padded = call(x, *weights)

    if out_padded.shape == (batch, out_dim):
        return out_padded
    return out_padded[:batch, :out_dim]


# -------------------------------------------------------------------- init / reference


def init_linear_params(key, fan_in, fan_out):
    """Deterministic init mirroring torch.nn.Linear default (uniform +/- 1/sqrt(fan_in))."""
    kw, kb = jax.random.split(key)
    bound = 1.0 / math.sqrt(fan_in)
    w = jax.random.uniform(kw, (fan_in, fan_out), jnp.float32, -bound, bound)
    b = jax.random.uniform(kb, (1, fan_out), jnp.float32, -bound, bound)
    return w, b


def reference_forward(x, params):
    w1, b1, w2, b2, w3, b3 = params
    h = jnp.maximum(x @ w1 + b1, 0.0)   # Dropout(0.1) is identity in eval mode
    h = jnp.tanh(h @ w2 + b2)
    return h @ w3 + b3


if __name__ == "__main__":
    in_dim, hidden_dim, out_dim = 16, 32, 8
    batch = 8

    key = jax.random.PRNGKey(0)
    kx, k1, k2, k3 = jax.random.split(key, 4)

    x = jax.random.normal(kx, (batch, in_dim), jnp.float32)
    w1, b1 = init_linear_params(k1, in_dim, hidden_dim)
    w2, b2 = init_linear_params(k2, hidden_dim, hidden_dim)
    w3, b3 = init_linear_params(k3, hidden_dim, out_dim)
    params = (w1, b1, w2, b2, w3, b3)

    prepared = prepare_params(params)      # one-time pad + bf16 cast (hoisted out of forward)
    out = mlp_forward(x, prepared)
    out = jax.block_until_ready(out)

    ref = reference_forward(x, params)
    assert out.shape == (batch, out_dim)
    # bf16 MXU operands with f32 accumulation -> relaxed tolerance vs f32 reference.
    assert jnp.allclose(out, ref, atol=2e-2, rtol=2e-2), "mismatch vs reference"

    print("KERNEL_OK")
</pallas_src>

<mosaic_0001>
module attributes {stable_mosaic.version = 11 : i64} {
  func.func @mlp_kernel(%arg0: i32, %arg1: memref<8x128xf32, #tpu.memory_space<vmem>>, %arg2: memref<128x128xbf16, #tpu.memory_space<vmem>>, %arg3: memref<1x128xf32, #tpu.memory_space<vmem>>, %arg4: memref<128x128xbf16, #tpu.memory_space<vmem>>, %arg5: memref<1x128xf32, #tpu.memory_space<vmem>>, %arg6: memref<128x128xbf16, #tpu.memory_space<vmem>>, %arg7: memref<1x128xf32, #tpu.memory_space<vmem>>, %arg8: memref<8x128xf32, #tpu.memory_space<vmem>>) attributes {dimension_semantics = [#tpu.dimension_semantics<parallel>], iteration_bounds = array<i64: 1>, scalar_prefetch = 0 : i64, scratch_operands = 0 : i64, tpu.core_type = #tpu.core_type<tc>, window_params = [{transform_indices = @transform_0, window_bounds = array<i64: 8, 128>}, {pipeline_mode = #tpu.pipeline_mode<synchronous>, transform_indices = @transform_1, window_bounds = array<i64: 128, 128>}, {pipeline_mode = #tpu.pipeline_mode<synchronous>, transform_indices = @transform_2, window_bounds = array<i64: 1, 128>}, {pipeline_mode = #tpu.pipeline_mode<synchronous>, transform_indices = @transform_3, window_bounds = array<i64: 128, 128>}, {pipeline_mode = #tpu.pipeline_mode<synchronous>, transform_indices = @transform_4, window_bounds = array<i64: 1, 128>}, {pipeline_mode = #tpu.pipeline_mode<synchronous>, transform_indices = @transform_5, window_bounds = array<i64: 128, 128>}, {pipeline_mode = #tpu.pipeline_mode<synchronous>, transform_indices = @transform_6, window_bounds = array<i64: 1, 128>}, {transform_indices = @transform_7, window_bounds = array<i64: 8, 128>}]} {
    %c0 = arith.constant 0 : index
    %c0_0 = arith.constant 0 : index
    %0 = vector.load %arg1[%c0, %c0_0] : memref<8x128xf32, #tpu.memory_space<vmem>>, vector<8x128xf32>
    %1 = arith.truncf %0 : vector<8x128xf32> to vector<8x128xbf16>
    %c0_1 = arith.constant 0 : index
    %c0_2 = arith.constant 0 : index
    %2 = vector.load %arg2[%c0_1, %c0_2] : memref<128x128xbf16, #tpu.memory_space<vmem>>, vector<128x128xbf16>
    %cst = arith.constant dense<0.000000e+00> : vector<8x128xf32>
    %3 = tpu.matmul %1, %2, %cst {dimension_numbers = #tpu.dot_dimension_numbers<[1], [0], [0], [1], [0, 0, 1, 1], [], []>} : vector<8x128xbf16>, vector<128x128xbf16>, vector<8x128xf32> -> vector<8x128xf32>
    %c0_3 = arith.constant 0 : index
    %c0_4 = arith.constant 0 : index
    %4 = vector.load %arg3[%c0_3, %c0_4] : memref<1x128xf32, #tpu.memory_space<vmem>>, vector<1x128xf32>
    %5 = vector.broadcast %4 : vector<1x128xf32> to vector<8x128xf32>
    %6 = arith.addf %3, %5 : vector<8x128xf32>
    %cst_5 = arith.constant 0.000000e+00 : f32
    %7 = vector.broadcast %cst_5 : f32 to vector<8x128xf32>
    %8 = arith.maximumf %6, %7 : vector<8x128xf32>
    %9 = arith.truncf %8 : vector<8x128xf32> to vector<8x128xbf16>
    %c0_6 = arith.constant 0 : index
    %c0_7 = arith.constant 0 : index
    %10 = vector.load %arg4[%c0_6, %c0_7] : memref<128x128xbf16, #tpu.memory_space<vmem>>, vector<128x128xbf16>
    %cst_8 = arith.constant dense<0.000000e+00> : vector<8x128xf32>
    %11 = tpu.matmul %9, %10, %cst_8 {dimension_numbers = #tpu.dot_dimension_numbers<[1], [0], [0], [1], [0, 0, 1, 1], [], []>} : vector<8x128xbf16>, vector<128x128xbf16>, vector<8x128xf32> -> vector<8x128xf32>
    %c0_9 = arith.constant 0 : index
    %c0_10 = arith.constant 0 : index
    %12 = vector.load %arg5[%c0_9, %c0_10] : memref<1x128xf32, #tpu.memory_space<vmem>>, vector<1x128xf32>
    %13 = vector.broadcast %12 : vector<1x128xf32> to vector<8x128xf32>
    %14 = arith.addf %11, %13 : vector<8x128xf32>
    %15 = math.tanh %14 : vector<8x128xf32>
    %16 = arith.truncf %15 : vector<8x128xf32> to vector<8x128xbf16>
    %c0_11 = arith.constant 0 : index
    %c0_12 = arith.constant 0 : index
    %17 = vector.load %arg6[%c0_11, %c0_12] : memref<128x128xbf16, #tpu.memory_space<vmem>>, vector<128x128xbf16>
    %cst_13 = arith.constant dense<0.000000e+00> : vector<8x128xf32>
    %18 = tpu.matmul %16, %17, %cst_13 {dimension_numbers = #tpu.dot_dimension_numbers<[1], [0], [0], [1], [0, 0, 1, 1], [], []>} : vector<8x128xbf16>, vector<128x128xbf16>, vector<8x128xf32> -> vector<8x128xf32>
    %c0_14 = arith.constant 0 : index
    %c0_15 = arith.constant 0 : index
    %19 = vector.load %arg7[%c0_14, %c0_15] : memref<1x128xf32, #tpu.memory_space<vmem>>, vector<1x128xf32>
    %20 = vector.broadcast %19 : vector<1x128xf32> to vector<8x128xf32>
    %21 = arith.addf %18, %20 : vector<8x128xf32>
    %c0_16 = arith.constant 0 : index
    %c0_17 = arith.constant 0 : index
    %22 = vector.load %arg8[%c0_16, %c0_17] : memref<8x128xf32, #tpu.memory_space<vmem>>, vector<8x128xf32>
    tpu.vector_store %arg8[%c0_16, %c0_17], %21 {strides = array<i32>} : memref<8x128xf32, #tpu.memory_space<vmem>>, vector<8x128xf32>,
    return
  }
  func.func @transform_0(%arg0: i32) -> (i32, i32) {
    %c0_i32 = arith.constant 0 : i32
    %c0_i32_0 = arith.constant 0 : i32
    return %arg0, %c0_i32 : i32, i32
  }
  func.func @transform_1(%arg0: i32) -> (i32, i32) {
    %c0_i32 = arith.constant 0 : i32
    %c0_i32_0 = arith.constant 0 : i32
    %c0_i32_1 = arith.constant 0 : i32
    return %c0_i32, %c0_i32_0 : i32, i32
  }
  func.func @transform_2(%arg0: i32) -> (i32, i32) {
    %c0_i32 = arith.constant 0 : i32
    %c0_i32_0 = arith.constant 0 : i32
    %c0_i32_1 = arith.constant 0 : i32
    return %c0_i32, %c0_i32_0 : i32, i32
  }
  func.func @transform_3(%arg0: i32) -> (i32, i32) {
    %c0_i32 = arith.constant 0 : i32
    %c0_i32_0 = arith.constant 0 : i32
    %c0_i32_1 = arith.constant 0 : i32
    return %c0_i32, %c0_i32_0 : i32, i32
  }
  func.func @transform_4(%arg0: i32) -> (i32, i32) {
    %c0_i32 = arith.constant 0 : i32
    %c0_i32_0 = arith.constant 0 : i32
    %c0_i32_1 = arith.constant 0 : i32
    return %c0_i32, %c0_i32_0 : i32, i32
  }
  func.func @transform_5(%arg0: i32) -> (i32, i32) {
    %c0_i32 = arith.constant 0 : i32
    %c0_i32_0 = arith.constant 0 : i32
    %c0_i32_1 = arith.constant 0 : i32
    return %c0_i32, %c0_i32_0 : i32, i32
  }
  func.func @transform_6(%arg0: i32) -> (i32, i32) {
    %c0_i32 = arith.constant 0 : i32
    %c0_i32_0 = arith.constant 0 : i32
    %c0_i32_1 = arith.constant 0 : i32
    return %c0_i32, %c0_i32_0 : i32, i32
  }
  func.func @transform_7(%arg0: i32) -> (i32, i32) {
    %c0_i32 = arith.constant 0 : i32
    %c0_i32_0 = arith.constant 0 : i32
    return %arg0, %c0_i32 : i32, i32
  }
}

module attributes {stable_mosaic.version = 11 : i64} {
  func.func @mlp_kernel(%arg0: i32, %arg1: memref<8x128xf32, #tpu.memory_space<vmem>>, %arg2: memref<128x128xbf16, #tpu.memory_space<vmem>>, %arg3: memref<1x128xf32, #tpu.memory_space<vmem>>, %arg4: memref<128x128xbf16, #tpu.memory_space<vmem>>, %arg5: memref<1x128xf32, #tpu.memory_space<vmem>>, %arg6: memref<128x128xbf16, #tpu.memory_space<vmem>>, %arg7: memref<1x128xf32, #tpu.memory_space<vmem>>, %arg8: memref<8x128xf32, #tpu.memory_space<vmem>>) attributes {dimension_semantics = [#tpu.dimension_semantics<parallel>], iteration_bounds = array<i64: 1>, scalar_prefetch = 0 : i64, scratch_operands = 0 : i64, tpu.core_type = #tpu.core_type<tc>, window_params = [{transform_indices = @transform_0, window_bounds = array<i64: 8, 128>}, {pipeline_mode = #tpu.pipeline_mode<synchronous>, transform_indices = @transform_1, window_bounds = array<i64: 128, 128>}, {pipeline_mode = #tpu.pipeline_mode<synchronous>, transform_indices = @transform_2, window_bounds = array<i64: 1, 128>}, {pipeline_mode = #tpu.pipeline_mode<synchronous>, transform_indices = @transform_3, window_bounds = array<i64: 128, 128>}, {pipeline_mode = #tpu.pipeline_mode<synchronous>, transform_indices = @transform_4, window_bounds = array<i64: 1, 128>}, {pipeline_mode = #tpu.pipeline_mode<synchronous>, transform_indices = @transform_5, window_bounds = array<i64: 128, 128>}, {pipeline_mode = #tpu.pipeline_mode<synchronous>, transform_indices = @transform_6, window_bounds = array<i64: 1, 128>}, {transform_indices = @transform_7, window_bounds = array<i64: 8, 128>}]} {
    %c0 = arith.constant 0 : index
    %c0_0 = arith.constant 0 : index
    %0 = vector.load %arg1[%c0, %c0_0] : memref<8x128xf32, #tpu.memory_space<vmem>>, vector<8x128xf32>
    %1 = arith.truncf %0 : vector<8x128xf32> to vector<8x128xbf16>
    %c0_1 = arith.constant 0 : index
    %c0_2 = arith.constant 0 : index
    %2 = vector.load %arg2[%c0_1, %c0_2] : memref<128x128xbf16, #tpu.memory_space<vmem>>, vector<128x128xbf16>
    %cst = arith.constant dense<0.000000e+00> : vector<8x128xf32>
    %3 = tpu.matmul %1, %2, %cst {dimension_numbers = #tpu.dot_dimension_numbers<[1], [0], [0], [1], [0, 0, 1, 1], [], []>} : vector<8x128xbf16>, vector<128x128xbf16>, vector<8x128xf32> -> vector<8x128xf32>
    %c0_3 = arith.constant 0 : index
    %c0_4 = arith.constant 0 : index
    %4 = vector.load %arg3[%c0_3, %c0_4] : memref<1x128xf32, #tpu.memory_space<vmem>>, vector<1x128xf32>
    %5 = vector.broadcast %4 : vector<1x128xf32> to vector<8x128xf32>
    %6 = arith.addf %3, %5 : vector<8x128xf32>
    %cst_5 = arith.constant 0.000000e+00 : f32
    %7 = vector.broadcast %cst_5 : f32 to vector<8x128xf32>
    %8 = arith.maximumf %6, %7 : vector<8x128xf32>
    %9 = arith.truncf %8 : vector<8x128xf32> to vector<8x128xbf16>
    %c0_6 = arith.constant 0 : index
    %c0_7 = arith.constant 0 : index
    %10 = vector.load %arg4[%c0_6, %c0_7] : memref<128x128xbf16, #tpu.memory_space<vmem>>, vector<128x128xbf16>
    %cst_8 = arith.constant dense<0.000000e+00> : vector<8x128xf32>
    %11 = tpu.matmul %9, %10, %cst_8 {dimension_numbers = #tpu.dot_dimension_numbers<[1], [0], [0], [1], [0, 0, 1, 1], [], []>} : vector<8x128xbf16>, vector<128x128xbf16>, vector<8x128xf32> -> vector<8x128xf32>
    %c0_9 = arith.constant 0 : index
    %c0_10 = arith.constant 0 : index
    %12 = vector.load %arg5[%c0_9, %c0_10] : memref<1x128xf32, #tpu.memory_space<vmem>>, vector<1x128xf32>
    %13 = vector.broadcast %12 : vector<1x128xf32> to vector<8x128xf32>
    %14 = arith.addf %11, %13 : vector<8x128xf32>
    %15 = math.tanh %14 : vector<8x128xf32>
    %16 = arith.truncf %15 : vector<8x128xf32> to vector<8x128xbf16>
    %c0_11 = arith.constant 0 : index
    %c0_12 = arith.constant 0 : index
    %17 = vector.load %arg6[%c0_11, %c0_12] : memref<128x128xbf16, #tpu.memory_space<vmem>>, vector<128x128xbf16>
    %cst_13 = arith.constant dense<0.000000e+00> : vector<8x128xf32>
    %18 = tpu.matmul %16, %17, %cst_13 {dimension_numbers = #tpu.dot_dimension_numbers<[1], [0], [0], [1], [0, 0, 1, 1], [], []>} : vector<8x128xbf16>, vector<128x128xbf16>, vector<8x128xf32> -> vector<8x128xf32>
    %c0_14 = arith.constant 0 : index
    %c0_15 = arith.constant 0 : index
    %19 = vector.load %arg7[%c0_14, %c0_15] : memref<1x128xf32, #tpu.memory_space<vmem>>, vector<1x128xf32>
    %20 = vector.broadcast %19 : vector<1x128xf32> to vector<8x128xf32>
    %21 = arith.addf %18, %20 : vector<8x128xf32>
    %c0_16 = arith.constant 0 : index
    %c0_17 = arith.constant 0 : index
    %22 = vector.load %arg8[%c0_16, %c0_17] : memref<8x128xf32, #tpu.memory_space<vmem>>, vector<8x128xf32>
    tpu.vector_store %arg8[%c0_16, %c0_17], %21 {strides = array<i32>} : memref<8x128xf32, #tpu.memory_space<vmem>>, vector<8x128xf32>,
    return
  }
  func.func @transform_0(%arg0: i32) -> (i32, i32) {
    %c0_i32 = arith.constant 0 : i32
    %c0_i32_0 = arith.constant 0 : i32
    return %arg0, %c0_i32 : i32, i32
  }
  func.func @transform_1(%arg0: i32) -> (i32, i32) {
    %c0_i32 = arith.constant 0 : i32
    %c0_i32_0 = arith.constant 0 : i32
    %c0_i32_1 = arith.constant 0 : i32
    return %c0_i32, %c0_i32_0 : i32, i32
  }
  func.func @transform_2(%arg0: i32) -> (i32, i32) {
    %c0_i32 = arith.constant 0 : i32
    %c0_i32_0 = arith.constant 0 : i32
    %c0_i32_1 = arith.constant 0 : i32
    return %c0_i32, %c0_i32_0 : i32, i32
  }
  func.func @transform_3(%arg0: i32) -> (i32, i32) {
    %c0_i32 = arith.constant 0 : i32
    %c0_i32_0 = arith.constant 0 : i32
    %c0_i32_1 = arith.constant 0 : i32
    return %c0_i32, %c0_i32_0 : i32, i32
  }
  func.func @transform_4(%arg0: i32) -> (i32, i32) {
    %c0_i32 = arith.constant 0 : i32
    %c0_i32_0 = arith.constant 0 : i32
    %c0_i32_1 = arith.constant 0 : i32
    return %c0_i32, %c0_i32_0 : i32, i32
  }
  func.func @transform_5(%arg0: i32) -> (i32, i32) {
    %c0_i32 = arith.constant 0 : i32
    %c0_i32_0 = arith.constant 0 : i32
    %c0_i32_1 = arith.constant 0 : i32
    return %c0_i32, %c0_i32_0 : i32, i32
  }
  func.func @transform_6(%arg0: i32) -> (i32, i32) {
    %c0_i32 = arith.constant 0 : i32
    %c0_i32_0 = arith.constant 0 : i32
    %c0_i32_1 = arith.constant 0 : i32
    return %c0_i32, %c0_i32_0 : i32, i32
  }
  func.func @transform_7(%arg0: i32) -> (i32, i32) {
    %c0_i32 = arith.constant 0 : i32
    %c0_i32_0 = arith.constant 0 : i32
    return %arg0, %c0_i32 : i32, i32
  }
}

</mosaic_0001>

<bundles_post_ra>
// kernel: tpu_custom_call.1
= control target key start
LH: loop header
LB: loop body
LE: loop exit
PB: predicated region body
PF: predicated region fallthrough
CT: control target
= control target key end

     0   :  { %12 = vsyncpa [#allocation3], 0  ;;  %s688_s0 = inlined_call_operand.hbm [shape: f32[8,128], index: 0, kind: input, shape index: {}]   ;;  %s689_s1 = inlined_call_operand.hbm [shape: bf16[128,128], index: 1, kind: input, shape index: {}]   ;;  %s690_s2 = inlined_call_operand.vmem [shape: f32[1,128], index: 2, kind: input, shape index: {}]   ;;  %s691_s3 = inlined_call_operand.hbm [shape: bf16[128,128], index: 3, kind: input, shape index: {}]   ;;  %s692_s4 = inlined_call_operand.vmem [shape: f32[1,128], index: 4, kind: input, shape index: {}]   ;;  %s693_s5 = inlined_call_operand.hbm [shape: bf16[128,128], index: 5, kind: input, shape index: {}]   ;;  %s694_s6 = inlined_call_operand.vmem [shape: f32[1,128], index: 6, kind: input, shape index: {}]   ;;  %s695_s7 = inlined_call_operand.hbm [shape: f32[8,128], index: 7, kind: output, shape index: {}]  }
   0x1   :  { %13 = vsyncpa [#allocation6], 0 }
   0x2   :  { %14 = vsyncpa [#allocation9], 0  ;;  %s31_s26 = sshll.u32 %s689_s1, 4  ;;  %s32_s26 = int_to_ptr.hbm [resolvable:$true] %s31_s26 }
   0x3   :  { %15 = vsyncpa [#allocation4], 0  ;;  %s617_s27 = smov [#allocation5]   ;;  %s21_s8 = sshll.u32 %s688_s0, 4  ;;  %s22_s8 = int_to_ptr.hbm [resolvable:$true] %s21_s8 }
   0x4   :  { %s33_s28 = sshll.u32 %s617_s27, 4  ;;  %s618_s9 = smov 64   ;;  %s34_s28 = int_to_ptr.vmem [resolvable:$true] %s33_s28 }
   0x5   :  { %s619_s10 = smov 4   ;;  %s620_s11 = smov [#allocation2]  }
   0x6   :  { %39 = dma.hbm_to_vmem [thread:$0]  %s32_s26, 1024, %s34_s28, [#allocation6], %s618_s9, %s618_s9, %s619_s10  }
   0x7   :  { %s23_s12 = sshll.u32 %s620_s11, 4  ;;  %s46_s15 = sshll.u32 %s691_s3, 4  ;;  %s24_s12 = int_to_ptr.vmem [resolvable:$true] %s23_s12  ;;  %s47_s15 = int_to_ptr.hbm [resolvable:$true] %s46_s15 }
   0x8   :  { %26 = dma.hbm_to_vmem [thread:$0]  %s22_s8, 128, %s24_s12, [#allocation3]  }
   0x9   :  { %s61_s17 = sshll.u32 %s693_s5, 4  ;;  %s621_s18 = smov [#allocation7]   ;;  %s62_s17 = int_to_ptr.hbm [resolvable:$true] %s61_s17 }
   0xa   :  { %s48_s19 = sshll.u32 %s621_s18, 4  ;;  %s622_s0 = smov [#allocation8]   ;;  %s49_s19 = int_to_ptr.vmem [resolvable:$true] %s48_s19 }
   0xb   :  { %54 = dma.hbm_to_vmem [thread:$0]  %s47_s15, 1024, %s49_s19, [#allocation6], %s618_s9, %s618_s9, %s619_s10  }
   0xc   :  { %s63_s20 = sshll.u32 %s622_s0, 4  ;;  %s64_s20 = int_to_ptr.vmem [resolvable:$true] %s63_s20 }
   0xd   :  { %69 = dma.hbm_to_vmem [thread:$0]  %s62_s17, 1024, %s64_s20, [#allocation9], %s618_s9, %s618_s9, %s619_s10  }
   0xe   :  { %609 = dma.done.wait [#allocation3], 128  }
   0xf   :  { %610 = vsyncadd [#allocation3], 4294967168 }
  0x10   :  { %611 = dma.done.wait [#allocation6], 2048  }
  0x11   :  { %612 = vsyncadd [#allocation6], 4294965248 }
  0x12   :  { %613 = dma.done.wait [#allocation9], 1024  }
  0x13   :  { %614 = vsyncadd [#allocation9], 4294966272  ;;  %v460_v0 = vld [vmem:[#allocation5 + $0x38] sm:$0xff]  ;;  %v459_v1 = vld [vmem:[#allocation5 + $0x30] sm:$0xff]  ;;  %s623_s24 = smov [#allocation10]   ;;  %s345_s28 = sshll.u32 %s695_s7, 4  ;;  %s346_s28 = int_to_ptr.hbm [resolvable:$true] %s345_s28 }
  0x14   :  { %158 = vmatpush.bf16.msra.mxu0 %v460_v0  ;;  %v468_v2 = vld [vmem:[#allocation7 + $0x38] sm:$0xff]  ;;  %v467_v3 = vld [vmem:[#allocation7 + $0x30] sm:$0xff]  ;;  %v458_v4 = vld [vmem:[#allocation5 + $0x28] sm:$0xff]  ;;  %s343_s25 = sshll.u32 %s623_s24, 4  ;;  %s344_s25 = int_to_ptr.vmem [resolvable:$true] %s343_s25 }
  0x15   :  { %241 = vmatpush.bf16.msra.mxu1 %v468_v2  ;;  %v466_v5 = vld [vmem:[#allocation7 + $0x28] sm:$0xff]  ;;  %v457_v6 = vld [vmem:[#allocation5 + $0x20] sm:$0xff]  ;;  %v456_v8 = vld [vmem:[#allocation5 + $0x18] sm:$0xff] }
  0x16   :  { %v465_v7 = vld [vmem:[#allocation7 + $0x20] sm:$0xff]  ;;  %v464_v9 = vld [vmem:[#allocation7 + $0x18] sm:$0xff]  ;;  %v455_v10 = vld [vmem:[#allocation5 + $0x10] sm:$0xff] }
  0x17   :  { %v463_v11 = vld [vmem:[#allocation7 + $0x10] sm:$0xff]  ;;  %v454_v12 = vld [vmem:[#allocation5 + $0x8] sm:$0xff]  ;;  %v453_v13 = vld [vmem:[#allocation5] sm:$0xff] }
  0x18   :  { %159 = vmatpush.bf16.msra.mxu0 %v459_v1  ;;  %v88_v14 = vld [vmem:[#allocation2] sm:$0xff]  ;;  %v462_v16 = vld [vmem:[#allocation7 + $0x8] sm:$0xff]  ;;  %v461_v17 = vld [vmem:[#allocation7] sm:$0xff] }
  0x19   :  { %242 = vmatpush.bf16.msra.mxu1 %v467_v3  ;;  %v89_v15 = vpack.c.bf16 %v88_v14, %v88_v14  ;;  %v476_v18 = vld [vmem:[#allocation8 + $0x38] sm:$0xff]  ;;  %v475_v19 = vld [vmem:[#allocation8 + $0x30] sm:$0xff]  ;;  %v474_v20 = vld [vmem:[#allocation8 + $0x28] sm:$0xff] }
  0x1a   :  { %324 = vmatpush.bf16.msra.mxu2 %v476_v18  ;;  %v473_v21 = vld [vmem:[#allocation8 + $0x20] sm:$0xff]  ;;  %v472_v22 = vld [vmem:[#allocation8 + $0x18] sm:$0xff]  ;;  %v471_v29 = vld [vmem:[#allocation8 + $0x10] sm:$0xff] }
  0x1b   :  { %v484_v23 = vld [vmem:[%s690_s2] ss:$0 sm:$0xff]  ;;  %v470_v30 = vld [vmem:[#allocation8 + $0x8] sm:$0xff]  ;;  %v469_v31 = vld [vmem:[#allocation8] sm:$0xff] }
  0x1c   :  { %160 = vmatpush.bf16.msra.mxu0 %v458_v4  ;;  %v485_v32 = vld [vmem:[%s692_s4] ss:$0 sm:$0xff] }
  0x1d   :  { %243 = vmatpush.bf16.msra.mxu1 %v466_v5  ;;  %v486_v38 = vld [vmem:[%s694_s6] ss:$0 sm:$0xff] }
  0x1e   :  { %325 = vmatpush.bf16.msra.mxu2 %v475_v19 }
  0x20   :  { %161 = vmatpush.bf16.msra.mxu0 %v457_v6 }
  0x21   :  { %244 = vmatpush.bf16.msra.mxu1 %v465_v7 }
  0x22   :  { %326 = vmatpush.bf16.msra.mxu2 %v474_v20 }
  0x24   :  { %162 = vmatpush.bf16.msra.mxu0 %v456_v8 }
  0x25   :  { %245 = vmatpush.bf16.msra.mxu1 %v464_v9 }
  0x26   :  { %327 = vmatpush.bf16.msra.mxu2 %v473_v21 }
  0x28   :  { %163 = vmatpush.bf16.msra.mxu0 %v455_v10 }
  0x29   :  { %246 = vmatpush.bf16.msra.mxu1 %v463_v11 }
  0x2a   :  { %328 = vmatpush.bf16.msra.mxu2 %v472_v22 }
  0x2c   :  { %164 = vmatpush.bf16.msra.mxu0 %v454_v12 }
  0x2d   :  { %247 = vmatpush.bf16.msra.mxu1 %v462_v16 }
  0x2e   :  { %329 = vmatpush.bf16.msra.mxu2 %v471_v29 }
  0x30   :  { %165 = vmatpush.bf16.msra.mxu0 %v453_v13 }
  0x31   :  { %248 = vmatpush.bf16.msra.mxu1 %v461_v17 }
  0x32   :  { %330 = vmatpush.bf16.msra.mxu2 %v470_v30 }
  0x33   :  { %166 = vmatmul.bf16.vlgmr.msra.gmra.mxu0 %v89_v15 }
  0x36   :  { %331 = vmatpush.bf16.msra.mxu2 %v469_v31 }
  0xb0   :  { %v167_v24 = vpop.f32.mrf.mxu0 }
  0xb1   :  { %v168_v25 = vadd.f32 %v484_v23, %v167_v24 }
  0xb3   :  { %v171_v26 = vmax.f32 %v168_v25, 0.0 }
  0xb5   :  { %v172_v27 = vpack.c.bf16 %v171_v26, %v171_v26 }
  0xb7   :  { %249 = vmatmul.bf16.vlgmr.msra.gmra.mxu1 %v172_v27 }
  0xb8   :  { %v169_v28 = vpop.f32.mrf.mxu0 }
 0x134   :  { %v250_v33 = vpop.f32.mrf.mxu1 }
 0x135   :  { %v251_v34 = vadd.f32 %v485_v32, %v250_v33 }
 0x137   :  { %487 = vtanh.f32 %v251_v34 }
 0x13c   :  { %v252_v35 = vpop.f32.mrf.mxu1 }
 0x13d   :  { %v488_v36 = vpop.eup %487 }
 0x13e   :  { %v255_v37 = vpack.c.bf16 %v488_v36, %v488_v36 }
 0x140   :  { %332 = vmatmul.bf16.vlgmr.msra.gmra.mxu2 %v255_v37 }
 0x1c3   :  { %v333_v39 = vpop.f32.mrf.mxu2 }
 0x1c4   :  { %v334_v40 = vadd.f32 %v486_v38, %v333_v39 }
 0x1c6   :  { %337 = vst [vmem:[#allocation10] sm:$0xff] %v334_v40 }
 0x1c7   :  { %348 = dma.vmem_to_hbm [thread:$0]  %s344_s25, 128, %s346_s28, [#allocation4]  }
 0x1cb   :  { %v335_v41 = vpop.f32.mrf.mxu2 }
 0x1cc   :  { %615 = dma.done.wait [#allocation4], 128  }
 0x1cd   :  { %616 = vsyncadd [#allocation4], 4294967168 }
 0x1ce   :  { %353 = vsyncpa [#allocation3], 1 }
 0x1cf   :  { %354 = vsyncpa [#allocation6], 1 }
 0x1d0   :  { %355 = vsyncpa [#allocation9], 1 }
 0x1d1   :  { %356 = vsyncpa [#allocation4], 1 }

// kernel: tpu_custom_call.1
= control target key start
LH: loop header
LB: loop body
LE: loop exit
PB: predicated region body
PF: predicated region fallthrough
CT: control target
= control target key end

     0   :  { %12 = vsyncpa [#allocation3], 0  ;;  %s688_s0 = inlined_call_operand.hbm [shape: f32[8,128], index: 0, kind: input, shape index: {}]   ;;  %s689_s1 = inlined_call_operand.hbm [shape: bf16[128,128], index: 1, kind: input, shape index: {}]   ;;  %s690_s2 = inlined_call_operand.vmem [shape: f32[1,128], index: 2, kind: input, shape index: {}]   ;;  %s691_s3 = inlined_call_operand.hbm [shape: bf16[128,128], index: 3, kind: input, shape index: {}]   ;;  %s692_s4 = inlined_call_operand.vmem [shape: f32[1,128], index: 4, kind: input, shape index: {}]   ;;  %s693_s5 = inlined_call_operand.hbm [shape: bf16[128,128], index: 5, kind: input, shape index: {}]   ;;  %s694_s6 = inlined_call_operand.vmem [shape: f32[1,128], index: 6, kind: input, shape index: {}]   ;;  %s695_s7 = inlined_call_operand.hbm [shape: f32[8,128], index: 7, kind: output, shape index: {}]  }
   0x1   :  { %13 = vsyncpa [#allocation6], 0 }
   0x2   :  { %14 = vsyncpa [#allocation9], 0  ;;  %s31_s26 = sshll.u32 %s689_s1, 4  ;;  %s32_s26 = int_to_ptr.hbm [resolvable:$true] %s31_s26 }
   0x3   :  { %15 = vsyncpa [#allocation4], 0  ;;  %s617_s27 = smov [#allocation5]   ;;  %s21_s8 = sshll.u32 %s688_s0, 4  ;;  %s22_s8 = int_to_ptr.hbm [resolvable:$true] %s21_s8 }
   0x4   :  { %s33_s28 = sshll.u32 %s617_s27, 4  ;;  %s618_s9 = smov 64   ;;  %s34_s28 = int_to_ptr.vmem [resolvable:$true] %s33_s28 }
   0x5   :  { %s619_s10 = smov 4   ;;  %s620_s11 = smov [#allocation2]  }
   0x6   :  { %39 = dma.hbm_to_vmem [thread:$0]  %s32_s26, 1024, %s34_s28, [#allocation6], %s618_s9, %s618_s9, %s619_s10  }
   0x7   :  { %s23_s12 = sshll.u32 %s620_s11, 4  ;;  %s46_s15 = sshll.u32 %s691_s3, 4  ;;  %s24_s12 = int_to_ptr.vmem [resolvable:$true] %s23_s12  ;;  %s47_s15 = int_to_ptr.hbm [resolvable:$true] %s46_s15 }
   0x8   :  { %26 = dma.hbm_to_vmem [thread:$0]  %s22_s8, 128, %s24_s12, [#allocation3]  }
   0x9   :  { %s61_s17 = sshll.u32 %s693_s5, 4  ;;  %s621_s18 = smov [#allocation7]   ;;  %s62_s17 = int_to_ptr.hbm [resolvable:$true] %s61_s17 }
   0xa   :  { %s48_s19 = sshll.u32 %s621_s18, 4  ;;  %s622_s0 = smov [#allocation8]   ;;  %s49_s19 = int_to_ptr.vmem [resolvable:$true] %s48_s19 }
   0xb   :  { %54 = dma.hbm_to_vmem [thread:$0]  %s47_s15, 1024, %s49_s19, [#allocation6], %s618_s9, %s618_s9, %s619_s10  }
   0xc   :  { %s63_s20 = sshll.u32 %s622_s0, 4  ;;  %s64_s20 = int_to_ptr.vmem [resolvable:$true] %s63_s20 }
   0xd   :  { %69 = dma.hbm_to_vmem [thread:$0]  %s62_s17, 1024, %s64_s20, [#allocation9], %s618_s9, %s618_s9, %s619_s10  }
   0xe   :  { %609 = dma.done.wait [#allocation3], 128  }
   0xf   :  { %610 = vsyncadd [#allocation3], 4294967168 }
  0x10   :  { %611 = dma.done.wait [#allocation6], 2048  }
  0x11   :  { %612 = vsyncadd [#allocation6], 4294965248 }
  0x12   :  { %613 = dma.done.wait [#allocation9], 1024  }
  0x13   :  { %614 = vsyncadd [#allocation9], 4294966272  ;;  %v460_v0 = vld [vmem:[#allocation5 + $0x38] sm:$0xff]  ;;  %v459_v1 = vld [vmem:[#allocation5 + $0x30] sm:$0xff]  ;;  %s623_s24 = smov [#allocation10]   ;;  %s345_s28 = sshll.u32 %s695_s7, 4  ;;  %s346_s28 = int_to_ptr.hbm [resolvable:$true] %s345_s28 }
  0x14   :  { %158 = vmatpush.bf16.msra.mxu0 %v460_v0  ;;  %v468_v2 = vld [vmem:[#allocation7 + $0x38] sm:$0xff]  ;;  %v467_v3 = vld [vmem:[#allocation7 + $0x30] sm:$0xff]  ;;  %v458_v4 = vld [vmem:[#allocation5 + $0x28] sm:$0xff]  ;;  %s343_s25 = sshll.u32 %s623_s24, 4  ;;  %s344_s25 = int_to_ptr.vmem [resolvable:$true] %s343_s25 }
  0x15   :  { %241 = vmatpush.bf16.msra.mxu1 %v468_v2  ;;  %v466_v5 = vld [vmem:[#allocation7 + $0x28] sm:$0xff]  ;;  %v457_v6 = vld [vmem:[#allocation5 + $0x20] sm:$0xff]  ;;  %v456_v8 = vld [vmem:[#allocation5 + $0x18] sm:$0xff] }
  0x16   :  { %v465_v7 = vld [vmem:[#allocation7 + $0x20] sm:$0xff]  ;;  %v464_v9 = vld [vmem:[#allocation7 + $0x18] sm:$0xff]  ;;  %v455_v10 = vld [vmem:[#allocation5 + $0x10] sm:$0xff] }
  0x17   :  { %v463_v11 = vld [vmem:[#allocation7 + $0x10] sm:$0xff]  ;;  %v454_v12 = vld [vmem:[#allocation5 + $0x8] sm:$0xff]  ;;  %v453_v13 = vld [vmem:[#allocation5] sm:$0xff] }
  0x18   :  { %159 = vmatpush.bf16.msra.mxu0 %v459_v1  ;;  %v88_v14 = vld [vmem:[#allocation2] sm:$0xff]  ;;  %v462_v16 = vld [vmem:[#allocation7 + $0x8] sm:$0xff]  ;;  %v461_v17 = vld [vmem:[#allocation7] sm:$0xff] }
  0x19   :  { %242 = vmatpush.bf16.msra.mxu1 %v467_v3  ;;  %v89_v15 = vpack.c.bf16 %v88_v14, %v88_v14  ;;  %v476_v18 = vld [vmem:[#allocation8 + $0x38] sm:$0xff]  ;;  %v475_v19 = vld [vmem:[#allocation8 + $0x30] sm:$0xff]  ;;  %v474_v20 = vld [vmem:[#allocation8 + $0x28] sm:$0xff] }
  0x1a   :  { %324 = vmatpush.bf16.msra.mxu2 %v476_v18  ;;  %v473_v21 = vld [vmem:[#allocation8 + $0x20] sm:$0xff]  ;;  %v472_v22 = vld [vmem:[#allocation8 + $0x18] sm:$0xff]  ;;  %v471_v29 = vld [vmem:[#allocation8 + $0x10] sm:$0xff] }
  0x1b   :  { %v484_v23 = vld [vmem:[%s690_s2] ss:$0 sm:$0xff]  ;;  %v470_v30 = vld [vmem:[#allocation8 + $0x8] sm:$0xff]  ;;  %v469_v31 = vld [vmem:[#allocation8] sm:$0xff] }
  0x1c   :  { %160 = vmatpush.bf16.msra.mxu0 %v458_v4  ;;  %v485_v32 = vld [vmem:[%s692_s4] ss:$0 sm:$0xff] }
  0x1d   :  { %243 = vmatpush.bf16.msra.mxu1 %v466_v5  ;;  %v486_v38 = vld [vmem:[%s694_s6] ss:$0 sm:$0xff] }
  0x1e   :  { %325 = vmatpush.bf16.msra.mxu2 %v475_v19 }
  0x20   :  { %161 = vmatpush.bf16.msra.mxu0 %v457_v6 }
  0x21   :  { %244 = vmatpush.bf16.msra.mxu1 %v465_v7 }
  0x22   :  { %326 = vmatpush.bf16.msra.mxu2 %v474_v20 }
  0x24   :  { %162 = vmatpush.bf16.msra.mxu0 %v456_v8 }
  0x25   :  { %245 = vmatpush.bf16.msra.mxu1 %v464_v9 }
  0x26   :  { %327 = vmatpush.bf16.msra.mxu2 %v473_v21 }
  0x28   :  { %163 = vmatpush.bf16.msra.mxu0 %v455_v10 }
  0x29   :  { %246 = vmatpush.bf16.msra.mxu1 %v463_v11 }
  0x2a   :  { %328 = vmatpush.bf16.msra.mxu2 %v472_v22 }
  0x2c   :  { %164 = vmatpush.bf16.msra.mxu0 %v454_v12 }
  0x2d   :  { %247 = vmatpush.bf16.msra.mxu1 %v462_v16 }
  0x2e   :  { %329 = vmatpush.bf16.msra.mxu2 %v471_v29 }
  0x30   :  { %165 = vmatpush.bf16.msra.mxu0 %v453_v13 }
  0x31   :  { %248 = vmatpush.bf16.msra.mxu1 %v461_v17 }
  0x32   :  { %330 = vmatpush.bf16.msra.mxu2 %v470_v30 }
  0x33   :  { %166 = vmatmul.bf16.vlgmr.msra.gmra.mxu0 %v89_v15 }
  0x36   :  { %331 = vmatpush.bf16.msra.mxu2 %v469_v31 }
  0xb0   :  { %v167_v24 = vpop.f32.mrf.mxu0 }
  0xb1   :  { %v168_v25 = vadd.f32 %v484_v23, %v167_v24 }
  0xb3   :  { %v171_v26 = vmax.f32 %v168_v25, 0.0 }
  0xb5   :  { %v172_v27 = vpack.c.bf16 %v171_v26, %v171_v26 }
  0xb7   :  { %249 = vmatmul.bf16.vlgmr.msra.gmra.mxu1 %v172_v27 }
  0xb8   :  { %v169_v28 = vpop.f32.mrf.mxu0 }
 0x134   :  { %v250_v33 = vpop.f32.mrf.mxu1 }
 0x135   :  { %v251_v34 = vadd.f32 %v485_v32, %v250_v33 }
 0x137   :  { %487 = vtanh.f32 %v251_v34 }
 0x13c   :  { %v252_v35 = vpop.f32.mrf.mxu1 }
 0x13d   :  { %v488_v36 = vpop.eup %487 }
 0x13e   :  { %v255_v37 = vpack.c.bf16 %v488_v36, %v488_v36 }
 0x140   :  { %332 = vmatmul.bf16.vlgmr.msra.gmra.mxu2 %v255_v37 }
 0x1c3   :  { %v333_v39 = vpop.f32.mrf.mxu2 }
 0x1c4   :  { %v334_v40 = vadd.f32 %v486_v38, %v333_v39 }
 0x1c6   :  { %337 = vst [vmem:[#allocation10] sm:$0xff] %v334_v40 }
 0x1c7   :  { %348 = dma.vmem_to_hbm [thread:$0]  %s344_s25, 128, %s346_s28, [#allocation4]  }
 0x1cb   :  { %v335_v41 = vpop.f32.mrf.mxu2 }
 0x1cc   :  { %615 = dma.done.wait [#allocation4], 128  }
 0x1cd   :  { %616 = vsyncadd [#allocation4], 4294967168 }
 0x1ce   :  { %353 = vsyncpa [#allocation3], 1 }
 0x1cf   :  { %354 = vsyncpa [#allocation6], 1 }
 0x1d0   :  { %355 = vsyncpa [#allocation9], 1 }
 0x1d1   :  { %356 = vsyncpa [#allocation4], 1 }

</bundles_post_ra>
